<compile_context>
chip_gen: v7x
topology: tpu7x:2x2x1
jax: 0.10.0
libtpu: 0.0.40
codegen_flags: <defaults>
</compile_context>

<pallas_src>
import jax
import jax.numpy as jnp
from jax.experimental import pallas as pl
from jax.experimental.pallas import tpu as pltpu

NUM_STATES = 4     # env.observation_space.shape[0] for CartPole
NUM_ACTIONS = 2    # env.action_space.n for CartPole
HIDDEN = 512
K_PAD = 8          # layer-1 contraction dim padded to one sublane group
OUT_PAD = 128      # lane-dense padded output width (one full vreg lane width)


def _round_up(x, m):
    return ((x + m - 1) // m) * m


def mlp_kernel(x_ref, w1_ref, b1_ref, w2_ref, b2_ref, o_ref):
    # x_ref:  [TB, K_PAD]        f32  (cols NUM_STATES..K_PAD-1 are zero)
    # w1_ref: [K_PAD, HIDDEN]    f32  (rows NUM_STATES..K_PAD-1 are zero)
    # b1_ref: [1, HIDDEN]        f32
    # w2_ref: [HIDDEN, OUT_PAD]  f32 or bf16 (cols NUM_ACTIONS..OUT_PAD-1 zero)
    # b2_ref: [1, OUT_PAD]       f32
    # o_ref:  [TB, OUT_PAD]      f32
    # Layer 1 on the MXU (K padded to 8), f32 accumulate, bias + ReLU on the VPU.
    h = jnp.dot(x_ref[...], w1_ref[...], preferred_element_type=jnp.float32)
    h = jnp.maximum(h + b1_ref[...], 0.0)
    # Layer 2 on the MXU, lane-dense 128-wide output, f32 accumulate.
    y = jnp.dot(h.astype(w2_ref.dtype), w2_ref[...],
                preferred_element_type=jnp.float32) + b2_ref[...]
    o_ref[...] = y.astype(o_ref.dtype)


def init_params(key):
    # nn.Linear-default init (uniform +/- 1/sqrt(fan_in)), torch [out, in] layout.
    k1, k2, k3, k4 = jax.random.split(key, 4)
    bound1 = 1.0 / jnp.sqrt(NUM_STATES)
    bound2 = 1.0 / jnp.sqrt(HIDDEN)
    w1 = jax.random.uniform(k1, (HIDDEN, NUM_STATES), jnp.float32, -bound1, bound1)
    b1 = jax.random.uniform(k2, (HIDDEN,), jnp.float32, -bound1, bound1)
    w2 = jax.random.uniform(k3, (NUM_ACTIONS, HIDDEN), jnp.float32, -bound2, bound2)
    b2 = jax.random.uniform(k4, (NUM_ACTIONS,), jnp.float32, -bound2, bound2)
    return w1, b1, w2, b2


def prepare_params(w1, b1, w2, b2, *, matmul_dtype=jnp.float32):
    """Done ONCE at init / param-update time (hoisted out of the forward pass).

    Takes torch-layout params (W: [out, in], b: [out]) and returns the
    kernel-layout tensors: pre-transposed, K-padded W1, lane-dense-padded W2/b2.
    """
    w1p = jnp.zeros((K_PAD, HIDDEN), jnp.float32)
    w1p = w1p.at[:NUM_STATES, :].set(w1.T.astype(jnp.float32))
    b1p = jnp.asarray(b1, jnp.float32).reshape(1, HIDDEN)
    w2p = jnp.zeros((HIDDEN, OUT_PAD), matmul_dtype)
    w2p = w2p.at[:, :NUM_ACTIONS].set(w2.T.astype(matmul_dtype))
    b2p = jnp.zeros((1, OUT_PAD), jnp.float32)
    b2p = b2p.at[:, :NUM_ACTIONS].set(jnp.asarray(b2, jnp.float32).reshape(1, NUM_ACTIONS))
    return w1p, b1p, w2p, b2p


def _small_forward(x, params):
    # Plain fused-XLA path for tiny action-selection batches (B <= 16): a
    # pallas_call launch + pads + slice would dwarf the <10 KFLOP of compute.
    w1p, b1p, w2p, b2p = params
    h = jnp.maximum(x @ w1p[:NUM_STATES, :] + b1p, 0.0)
    y = (h.astype(w2p.dtype) @ w2p).astype(jnp.float32) + b2p
    return y[:, :NUM_ACTIONS]


def model_forward(x, params, *, tile_b=512, small_batch_cutoff=16):
    """x: [B, NUM_STATES] f32, params from prepare_params(). Returns [B, NUM_ACTIONS] f32."""
    w1p, b1p, w2p, b2p = params
    B = x.shape[0]
    if B <= small_batch_cutoff:
        return _small_forward(x, params)

    # Tile / grid selection: always a multiple of 8 rows; once B >= 64 split into
    # >= 2 "parallel" tiles so both v7x TensorCores get work; big replay batches
    # use large tiles (tile_b rows) to amortize per-grid-step overhead.
    tile_b = _round_up(max(tile_b, 8), 8)
    if B < 64:
        tb = _round_up(B, 8)
    elif B <= 2 * tile_b:
        tb = _round_up((B + 1) // 2, 8)
    else:
        tb = tile_b
    padded_b = _round_up(B, tb)
    grid = (padded_b // tb,)

    # Single small pad per call: batch rows up to the tile multiple and the
    # feature dim 4 -> K_PAD (zeros, annihilated by the zero rows of w1p).
    x_p = jnp.pad(x, ((0, padded_b - B), (0, K_PAD - NUM_STATES)))

    out = pl.pallas_call(
        mlp_kernel,
        out_shape=jax.ShapeDtypeStruct((padded_b, OUT_PAD), jnp.float32),
        grid_spec=pltpu.PrefetchScalarGridSpec(
            num_scalar_prefetch=0,
            grid=grid,
            in_specs=[
                pl.BlockSpec((tb, K_PAD), lambda i: (i, 0)),
                # Constant index_map -> weights stay VMEM-resident across the grid.
                pl.BlockSpec((K_PAD, HIDDEN), lambda i: (0, 0)),
                pl.BlockSpec((1, HIDDEN), lambda i: (0, 0)),
                pl.BlockSpec((HIDDEN, OUT_PAD), lambda i: (0, 0)),
                pl.BlockSpec((1, OUT_PAD), lambda i: (0, 0)),
            ],
            out_specs=pl.BlockSpec((tb, OUT_PAD), lambda i: (i, 0)),
        ),
        compiler_params=pltpu.CompilerParams(
            dimension_semantics=("parallel",),
        ),
    )(x_p, w1p, b1p, w2p, b2p)

    # TODO(synk): DQN consumers (TD loss / argmax over Q) could accept the padded
    # [padded_b, OUT_PAD] output directly to avoid this extra slice launch and
    # the 64x output-write amplification.
    return out[:B, :NUM_ACTIONS]


def _reference(x, w1, b1, w2, b2):
    # Matches the PyTorch module: relu(x @ W1.T + b1) @ W2.T + b2.
    return jnp.maximum(x @ w1.T + b1, 0.0) @ w2.T + b2


if __name__ == "__main__":
    key = jax.random.PRNGKey(0)
    kp, kx1, kx2, kx3 = jax.random.split(key, 4)
    w1, b1, w2, b2 = init_params(kp)
    params = prepare_params(w1, b1, w2, b2)                       # f32 kernel params
    params_bf16 = prepare_params(w1, b1, w2, b2,                  # bf16 layer-2 weights
                                 matmul_dtype=jnp.bfloat16)

    # Medium batch, multiple of 8, below the split threshold -> grid=(1,).
    B1 = 24
    x1 = jax.random.normal(kx1, (B1, NUM_STATES), jnp.float32)
    out1 = model_forward(x1, params)
    jax.block_until_ready(out1)
    ref1 = _reference(x1, w1, b1, w2, b2)
    assert out1.shape == (B1, NUM_ACTIONS)
    assert jnp.allclose(out1, ref1, atol=1e-5, rtol=1e-5)

    # Replay-batch sized, not a multiple of 8 -> batch padding + grid=(2,)
    # ("parallel" axis feeds both TensorCores on v7x).
    B2 = 100
    x2 = jax.random.normal(kx2, (B2, NUM_STATES), jnp.float32)
    out2 = model_forward(x2, params)
    jax.block_until_ready(out2)
    ref2 = _reference(x2, w1, b1, w2, b2)
    assert out2.shape == (B2, NUM_ACTIONS)
    assert jnp.allclose(out2, ref2, atol=1e-5, rtol=1e-5)

    # Tiny action-selection batch -> plain-JAX bypass path.
    B3 = 3
    x3 = jax.random.normal(kx3, (B3, NUM_STATES), jnp.float32)
    out3 = model_forward(x3, params)
    jax.block_until_ready(out3)
    ref3 = _reference(x3, w1, b1, w2, b2)
    assert out3.shape == (B3, NUM_ACTIONS)
    assert jnp.allclose(out3, ref3, atol=1e-5, rtol=1e-5)

    # bf16 layer-2 weights (f32 accumulation): loose tolerance vs f32 reference.
    out4 = model_forward(x2, params_bf16)
    jax.block_until_ready(out4)
    assert out4.shape == (B2, NUM_ACTIONS)
    assert jnp.allclose(out4, ref2, atol=2e-2, rtol=2e-2)

    print("KERNEL_OK")
</pallas_src>

<mosaic_0001>
module attributes {stable_mosaic.version = 11 : i64} {
  func.func @mlp_kernel(%arg0: i32, %arg1: memref<24x8xf32, #tpu.memory_space<vmem>>, %arg2: memref<8x512xf32, #tpu.memory_space<vmem>>, %arg3: memref<1x512xf32, #tpu.memory_space<vmem>>, %arg4: memref<512x128xf32, #tpu.memory_space<vmem>>, %arg5: memref<1x128xf32, #tpu.memory_space<vmem>>, %arg6: memref<24x128xf32, #tpu.memory_space<vmem>>) attributes {dimension_semantics = [#tpu.dimension_semantics<parallel>], iteration_bounds = array<i64: 1>, scalar_prefetch = 0 : i64, scratch_operands = 0 : i64, tpu.core_type = #tpu.core_type<tc>, window_params = [{transform_indices = @transform_0, window_bounds = array<i64: 24, 8>}, {pipeline_mode = #tpu.pipeline_mode<synchronous>, transform_indices = @transform_1, window_bounds = array<i64: 8, 512>}, {pipeline_mode = #tpu.pipeline_mode<synchronous>, transform_indices = @transform_2, window_bounds = array<i64: 1, 512>}, {pipeline_mode = #tpu.pipeline_mode<synchronous>, transform_indices = @transform_3, window_bounds = array<i64: 512, 128>}, {pipeline_mode = #tpu.pipeline_mode<synchronous>, transform_indices = @transform_4, window_bounds = array<i64: 1, 128>}, {transform_indices = @transform_5, window_bounds = array<i64: 24, 128>}]} {
    %c0 = arith.constant 0 : index
    %c0_0 = arith.constant 0 : index
    %0 = vector.load %arg1[%c0, %c0_0] : memref<24x8xf32, #tpu.memory_space<vmem>>, vector<24x8xf32>
    %c0_1 = arith.constant 0 : index
    %c0_2 = arith.constant 0 : index
    %1 = vector.load %arg2[%c0_1, %c0_2] : memref<8x512xf32, #tpu.memory_space<vmem>>, vector<8x512xf32>
    %cst = arith.constant dense<0.000000e+00> : vector<24x512xf32>
    %2 = tpu.matmul %0, %1, %cst {dimension_numbers = #tpu.dot_dimension_numbers<[1], [0], [0], [1], [0, 0, 1, 1], [], []>} : vector<24x8xf32>, vector<8x512xf32>, vector<24x512xf32> -> vector<24x512xf32>
    %c0_3 = arith.constant 0 : index
    %c0_4 = arith.constant 0 : index
    %3 = vector.load %arg3[%c0_3, %c0_4] : memref<1x512xf32, #tpu.memory_space<vmem>>, vector<1x512xf32>
    %4 = vector.broadcast %3 : vector<1x512xf32> to vector<24x512xf32>
    %5 = arith.addf %2, %4 : vector<24x512xf32>
    %cst_5 = arith.constant 0.000000e+00 : f32
    %6 = vector.broadcast %cst_5 : f32 to vector<24x512xf32>
    %7 = arith.maximumf %5, %6 : vector<24x512xf32>
    %c0_6 = arith.constant 0 : index
    %c0_7 = arith.constant 0 : index
    %8 = vector.load %arg4[%c0_6, %c0_7] : memref<512x128xf32, #tpu.memory_space<vmem>>, vector<512x128xf32>
    %cst_8 = arith.constant dense<0.000000e+00> : vector<24x128xf32>
    %9 = tpu.matmul %7, %8, %cst_8 {dimension_numbers = #tpu.dot_dimension_numbers<[1], [0], [0], [1], [0, 0, 1, 1], [], []>} : vector<24x512xf32>, vector<512x128xf32>, vector<24x128xf32> -> vector<24x128xf32>
    %c0_9 = arith.constant 0 : index
    %c0_10 = arith.constant 0 : index
    %10 = vector.load %arg5[%c0_9, %c0_10] : memref<1x128xf32, #tpu.memory_space<vmem>>, vector<1x128xf32>
    %11 = vector.broadcast %10 : vector<1x128xf32> to vector<24x128xf32>
    %12 = arith.addf %9, %11 : vector<24x128xf32>
    %c0_11 = arith.constant 0 : index
    %c0_12 = arith.constant 0 : index
    %13 = vector.load %arg6[%c0_11, %c0_12] : memref<24x128xf32, #tpu.memory_space<vmem>>, vector<24x128xf32>
    tpu.vector_store %arg6[%c0_11, %c0_12], %12 {strides = array<i32>} : memref<24x128xf32, #tpu.memory_space<vmem>>, vector<24x128xf32>,
    return
  }
  func.func @transform_0(%arg0: i32) -> (i32, i32) {
    %c0_i32 = arith.constant 0 : i32
    %c0_i32_0 = arith.constant 0 : i32
    return %arg0, %c0_i32 : i32, i32
  }
  func.func @transform_1(%arg0: i32) -> (i32, i32) {
    %c0_i32 = arith.constant 0 : i32
    %c0_i32_0 = arith.constant 0 : i32
    %c0_i32_1 = arith.constant 0 : i32
    return %c0_i32, %c0_i32_0 : i32, i32
  }
  func.func @transform_2(%arg0: i32) -> (i32, i32) {
    %c0_i32 = arith.constant 0 : i32
    %c0_i32_0 = arith.constant 0 : i32
    %c0_i32_1 = arith.constant 0 : i32
    return %c0_i32, %c0_i32_0 : i32, i32
  }
  func.func @transform_3(%arg0: i32) -> (i32, i32) {
    %c0_i32 = arith.constant 0 : i32
    %c0_i32_0 = arith.constant 0 : i32
    %c0_i32_1 = arith.constant 0 : i32
    return %c0_i32, %c0_i32_0 : i32, i32
  }
  func.func @transform_4(%arg0: i32) -> (i32, i32) {
    %c0_i32 = arith.constant 0 : i32
    %c0_i32_0 = arith.constant 0 : i32
    %c0_i32_1 = arith.constant 0 : i32
    return %c0_i32, %c0_i32_0 : i32, i32
  }
  func.func @transform_5(%arg0: i32) -> (i32, i32) {
    %c0_i32 = arith.constant 0 : i32
    %c0_i32_0 = arith.constant 0 : i32
    return %arg0, %c0_i32 : i32, i32
  }
}

</mosaic_0001>

<bundles_post_ra>
// kernel: tpu_custom_call.1
= control target key start
LH: loop header
LB: loop body
LE: loop exit
PB: predicated region body
PF: predicated region fallthrough
CT: control target
= control target key end

     0   :  { %10 = vsyncpa [#allocation3], 0  ;;  %s807_s0 = inlined_call_operand.vmem [shape: f32[24,8], index: 0, kind: input, shape index: {}]   ;;  %s808_s1 = inlined_call_operand.vmem [shape: f32[8,512], index: 1, kind: input, shape index: {}]   ;;  %s809_s2 = inlined_call_operand.vmem [shape: f32[1,512], index: 2, kind: input, shape index: {}]   ;;  %s810_s3 = inlined_call_operand.hbm [shape: f32[512,128], index: 3, kind: input, shape index: {}]   ;;  %s811_s4 = inlined_call_operand.vmem [shape: f32[1,128], index: 4, kind: input, shape index: {}]   ;;  %s812_s5 = inlined_call_operand.hbm [shape: f32[24,128], index: 5, kind: output, shape index: {}]  }
   0x1   :  { %11 = vsyncpa [#allocation4], 0  ;;  %s709_s18 = smov [#allocation2]   ;;  %s661_s22 = scalar_lea.hbm %s810_s3, 8192 }
   0x2   :  { %s23_s19 = sshll.u32 %s709_s18, 4  ;;  %p662_p0 = scmp.ne.s32.totalorder %s810_s3, %s661_s22  ;;  %s24_s19 = int_to_ptr.vmem [resolvable:$true] %s23_s19 }
   0x3   :  { %p665_p1 = scmp.lt.u32.totalorder %s661_s22, %s810_s3 }
   0x5   :  { %p667_p2 = pnand %p665_p1, %p662_p0 }
   0x7   :  { %670 = shalt.err (!%p667_p2)
}
   0x8   :  { %s671_s27 = scalar_lea.vmem %s24_s19, 8192  ;;  %p676_p4 = scmp.lt.s32.totalorder %s24_s19, %s24_s19 }
   0x9   :  { %p672_p3 = scmp.ne.s32.totalorder %s24_s19, %s671_s27  ;;  %p677_p5 = scmp.lt.s32.totalorder %s671_s27, %s671_s27 }
   0xb   :  { %p678_p6 = por %p677_p5, %p676_p4 }
   0xd   :  { %p679_p7 = pnand %p678_p6, %p672_p3 }
   0xf   :  { %682 = shalt.err (!%p679_p7)
}
  0x10   :  { %s710_s28 = smov 128   ;;  %s711_s29 = smov 8  }
  0x11   :  { %29 = dma.hbm_to_vmem [thread:$0]  %s810_s3, 8192, %s24_s19, [#allocation3], %s710_s28, %s710_s28, %s711_s29  }
  0x12   :  { %705 = dma.done.wait [#allocation3], 8192  }
  0x13   :  { %706 = vsyncadd [#allocation3], 4294959104  ;;  %v712_v0 = vmov 0.0   ;;  %v39_v1 = vld [vmem:[%s808_s1 + $0x8] sm:$0xff]  ;;  %v41_v2 = vld [vmem:[%s808_s1 + $0x18] sm:$0xff]  ;;  %vm64_vm0 = vcmask 64512  }
  0x14   :  { %138 = vmatprep.mubr.f32.mxu0 %v712_v0  ;;  %221 = vmatprep.mubr.f32.mxu1 %v712_v0  ;;  %v38_v3 = vld [vmem:[%s808_s1] sm:$0xff]  ;;  %v40_v4 = vld [vmem:[%s808_s1 + $0x10] sm:$0xff]  ;;  %v36_v6 = vld [vmem:[%s807_s0 + $0x8] sm:$0xff] }
  0x15   :  { %74 = vmatprep.subr.mxu0 %v39_v1  ;;  %157 = vmatprep.subr.mxu1 %v41_v2  ;;  %v35_v5 = vld [vmem:[%s807_s0] sm:$0xff]  ;;  %v269_v8 = vld [vmem:[#allocation2 + $0x88] sm:$0xff]  ;;  %v270_v19 = vld [vmem:[#allocation2 + $0x90] sm:$0xff] }
  0x16   :  { %75 = vmatpush1.msra.mxu0 %v38_v3  ;;  %158 = vmatpush1.msra.mxu1 %v40_v4  ;;  %v268_v7 = vld [vmem:[#allocation2 + $0x80] sm:$0xff]  ;;  %v301_v11 = vld [vmem:[#allocation2 + $0x188] sm:$0xff]  ;;  %v271_v20 = vld [vmem:[#allocation2 + $0x98] sm:$0xff] }
  0x17   :  { %503 = vmatmul.mubr.msk.f32.vlgmr.msra.gmra.mrb[0].mxu0 %vm64_vm0, %v35_v5  ;;  %506 = vmatmul.mubr.msk.f32.vlgmr.msra.gmra.mrb[0].mxu1 %vm64_vm0, %v35_v5  ;;  %v592_v9 = vpack.c.bf16 %v269_v8, %v268_v7  ;;  %v300_v10 = vld [vmem:[#allocation2 + $0x180] sm:$0xff]  ;;  %v253_v14 = vld [vmem:[#allocation2 + $0x8] sm:$0xff]  ;;  %v302_v21 = vld [vmem:[#allocation2 + $0x190] sm:$0xff]  ;;  %v596_v23 = vpack.c.bf16 %v271_v20, %v270_v19 }
  0x18   :  { %v252_v12 = vld [vmem:[#allocation2] sm:$0xff]  ;;  %144 = vmatprep.mubr.f32.mxu0 %v712_v0  ;;  %227 = vmatprep.mubr.f32.mxu1 %v712_v0  ;;  %v624_v13 = vpack.c.bf16 %v301_v11, %v300_v10  ;;  %v285_v16 = vld [vmem:[#allocation2 + $0x108] sm:$0xff]  ;;  %v37_v22 = vld [vmem:[%s807_s0 + $0x10] sm:$0xff] }
  0x19   :  { %v284_v15 = vld [vmem:[#allocation2 + $0x100] sm:$0xff]  ;;  %593 = vmatprep.subr.bf16.mxu0 %v592_v9  ;;  %v594_v17 = vpack.c.bf16 %v253_v14, %v252_v12  ;;  %v303_v24 = vld [vmem:[#allocation2 + $0x198] sm:$0xff]  ;;  %v254_v25 = vld [vmem:[#allocation2 + $0x10] sm:$0xff] }
  0x1a   :  { %v626_v18 = vpack.c.bf16 %v285_v16, %v284_v15  ;;  %625 = vmatprep.subr.bf16.mxu1 %v624_v13  ;;  %v255_v26 = vld [vmem:[#allocation2 + $0x18] sm:$0xff]  ;;  %v628_v27 = vpack.c.bf16 %v303_v24, %v302_v21  ;;  %v286_v28 = vld [vmem:[#allocation2 + $0x110] sm:$0xff]  ;;  %v272_v30 = vld [vmem:[#allocation2 + $0xa0] sm:$0xff] }
  0x1b   :  { %504 = vmatmul.mubr.msk.f32.gmra.mrb[2].mxu0 %vm64_vm0, %v36_v6  ;;  %507 = vmatmul.mubr.msk.f32.gmra.mrb[2].mxu1 %vm64_vm0, %v36_v6  ;;  %v287_v29 = vld [vmem:[#allocation2 + $0x118] sm:$0xff]  ;;  %v273_v31 = vld [vmem:[#allocation2 + $0xa8] sm:$0xff]  ;;  %v304_v32 = vld [vmem:[#allocation2 + $0x1a0] sm:$0xff]  ;;  %v598_v34 = vpack.c.bf16 %v255_v26, %v254_v25 }
  0x1c   :  { %150 = vmatprep.mubr.f32.mxu0 %v712_v0  ;;  %233 = vmatprep.mubr.f32.mxu1 %v712_v0  ;;  %v305_v33 = vld [vmem:[#allocation2 + $0x1a8] sm:$0xff]  ;;  %v630_v35 = vpack.c.bf16 %v287_v29, %v286_v28  ;;  %v256_v36 = vld [vmem:[#allocation2 + $0x20] sm:$0xff]  ;;  %v600_v38 = vpack.c.bf16 %v273_v31, %v272_v30  ;;  %v274_v42 = vld [vmem:[#allocation2 + $0xb0] sm:$0xff] }
  0x1d   :  { %595 = vmatpush3.bf16.msra.mxu0 %v594_v17  ;;  %627 = vmatpush3.bf16.msra.mxu1 %v626_v18  ;;  %v257_v37 = vld [vmem:[#allocation2 + $0x28] sm:$0xff]  ;;  %v632_v39 = vpack.c.bf16 %v305_v33, %v304_v32  ;;  %v288_v40 = vld [vmem:[#allocation2 + $0x120] sm:$0xff]  ;;  %v275_v43 = vld [vmem:[#allocation2 + $0xb8] sm:$0xff] }
  0x1e   :  { %597 = vmatprep.subr.bf16.mxu0 %v596_v23  ;;  %629 = vmatprep.subr.bf16.mxu1 %v628_v27  ;;  %v289_v41 = vld [vmem:[#allocation2 + $0x128] sm:$0xff]  ;;  %v306_v44 = vld [vmem:[#allocation2 + $0x1b0] sm:$0xff]  ;;  %v307_v45 = vld [vmem:[#allocation2 + $0x1b8] sm:$0xff]  ;;  %v602_v46 = vpack.c.bf16 %v257_v37, %v256_v36  ;;  %v604_v50 = vpack.c.bf16 %v275_v43, %v274_v42 }
  0x1f   :  { %505 = vmatmul.mubr.msk.f32.gmra.mrb[4].mxu0 %vm64_vm0, %v37_v22  ;;  %508 = vmatmul.mubr.msk.f32.gmra.mrb[4].mxu1 %vm64_vm0, %v37_v22  ;;  %v634_v47 = vpack.c.bf16 %v289_v41, %v288_v40  ;;  %v258_v48 = vld [vmem:[#allocation2 + $0x30] sm:$0xff]  ;;  %v259_v49 = vld [vmem:[#allocation2 + $0x38] sm:$0xff]  ;;  %v636_v51 = vpack.c.bf16 %v307_v45, %v306_v44  ;;  %v276_v54 = vld [vmem:[#allocation2 + $0xc0] sm:$0xff]  ;;  %v44_v40 = vlaneseq }
  0x20   :  { %v290_v52 = vld [vmem:[#allocation2 + $0x130] sm:$0xff]  ;;  %v291_v53 = vld [vmem:[#allocation2 + $0x138] sm:$0xff]  ;;  %v277_v55 = vld [vmem:[#allocation2 + $0xc8] sm:$0xff]  ;;  %v606_v58 = vpack.c.bf16 %v259_v49, %v258_v48 }
  0x21   :  { %599 = vmatpush3.bf16.msra.mxu0 %v598_v34  ;;  %631 = vmatpush3.bf16.msra.mxu1 %v630_v35  ;;  %v308_v56 = vld [vmem:[#allocation2 + $0x1c0] sm:$0xff]  ;;  %v309_v57 = vld [vmem:[#allocation2 + $0x1c8] sm:$0xff]  ;;  %v638_v59 = vpack.c.bf16 %v291_v53, %v290_v52  ;;  %v608_v62 = vpack.c.bf16 %v277_v55, %v276_v54  ;;  %v278_v2 = vld [vmem:[#allocation2 + $0xd0] sm:$0xff]  ;;  %v45_v41 = vshrl.u32 %v44_v40, 7 }
  0x22   :  { %601 = vmatprep.subr.bf16.mxu0 %v600_v38  ;;  %633 = vmatprep.subr.bf16.mxu1 %v632_v39  ;;  %v260_v60 = vld [vmem:[#allocation2 + $0x40] sm:$0xff]  ;;  %v261_v61 = vld [vmem:[#allocation2 + $0x48] sm:$0xff]  ;;  %v640_v63 = vpack.c.bf16 %v309_v57, %v308_v56  ;;  %v279_v3 = vld [vmem:[#allocation2 + $0xd8] sm:$0xff] }
  0x23   :  { %v292_v0 = vld [vmem:[#allocation2 + $0x140] sm:$0xff]  ;;  %v293_v1 = vld [vmem:[#allocation2 + $0x148] sm:$0xff]  ;;  %v310_v4 = vld [vmem:[#allocation2 + $0x1d0] sm:$0xff]  ;;  %v610_v6 = vpack.c.bf16 %v261_v61, %v260_v60  ;;  %v612_v10 = vpack.c.bf16 %v279_v3, %v278_v2  ;;  %v46_v42 = vsub.s32 0, %v45_v41  ;;  %v54_v43 = vsub.s32 2, %v45_v41 }
  0x24   :  { %v311_v5 = vld [vmem:[#allocation2 + $0x1d8] sm:$0xff]  ;;  %v642_v7 = vpack.c.bf16 %v293_v1, %v292_v0  ;;  %v262_v8 = vld [vmem:[#allocation2 + $0x50] sm:$0xff]  ;;  %v280_v14 = vld [vmem:[#allocation2 + $0xe0] sm:$0xff]  ;;  %v50_v45 = vsub.s32 1, %v45_v41 }
  0x25   :  { %603 = vmatpush3.bf16.msra.mxu0 %v602_v46  ;;  %635 = vmatpush3.bf16.msra.mxu1 %v634_v47  ;;  %v263_v9 = vld [vmem:[#allocation2 + $0x58] sm:$0xff]  ;;  %v644_v11 = vpack.c.bf16 %v311_v5, %v310_v4  ;;  %v294_v12 = vld [vmem:[#allocation2 + $0x150] sm:$0xff]  ;;  %v281_v15 = vld [vmem:[#allocation2 + $0xe8] sm:$0xff]  ;;  %v58_v46 = vsub.s32 3, %v45_v41 }
  0x26   :  { %605 = vmatprep.subr.bf16.mxu0 %v604_v50  ;;  %637 = vmatprep.subr.bf16.mxu1 %v636_v51  ;;  %v295_v13 = vld [vmem:[#allocation2 + $0x158] sm:$0xff]  ;;  %v312_v16 = vld [vmem:[#allocation2 + $0x1e0] sm:$0xff]  ;;  %v313_v17 = vld [vmem:[#allocation2 + $0x1e8] sm:$0xff]  ;;  %v614_v18 = vpack.c.bf16 %v263_v9, %v262_v8  ;;  %v616_v20 = vpack.c.bf16 %v281_v15, %v280_v14 }
  0x27   :  { %v646_v19 = vpack.c.bf16 %v295_v13, %v294_v12  ;;  %v648_v21 = vpack.c.bf16 %v313_v17, %v312_v16  ;;  %v264_v22 = vld [vmem:[#allocation2 + $0x60] sm:$0xff]  ;;  %v265_v23 = vld [vmem:[#allocation2 + $0x68] sm:$0xff]  ;;  %v282_v28 = vld [vmem:[#allocation2 + $0xf0] sm:$0xff] }
  0x28   :  { %v296_v24 = vld [vmem:[#allocation2 + $0x160] sm:$0xff]  ;;  %v618_v25 = vpack.c.bf16 %v265_v23, %v264_v22  ;;  %v297_v26 = vld [vmem:[#allocation2 + $0x168] sm:$0xff]  ;;  %v283_v29 = vld [vmem:[#allocation2 + $0xf8] sm:$0xff] }
  0x29   :  { %607 = vmatpush3.bf16.msra.mxu0 %v606_v58  ;;  %639 = vmatpush3.bf16.msra.mxu1 %v638_v59  ;;  %v650_v27 = vpack.c.bf16 %v297_v26, %v296_v24  ;;  %v314_v30 = vld [vmem:[#allocation2 + $0x1f0] sm:$0xff]  ;;  %v620_v31 = vpack.c.bf16 %v283_v29, %v282_v28  ;;  %v315_v32 = vld [vmem:[#allocation2 + $0x1f8] sm:$0xff]  ;;  %v42_v44 = vld [vmem:[%s809_s2] sm:$0xf] }
  0x2a   :  { %609 = vmatprep.subr.bf16.mxu0 %v608_v62  ;;  %641 = vmatprep.subr.bf16.mxu1 %v640_v63  ;;  %v266_v33 = vld [vmem:[#allocation2 + $0x70] sm:$0xff]  ;;  %v267_v34 = vld [vmem:[#allocation2 + $0x78] sm:$0xff]  ;;  %v652_v35 = vpack.c.bf16 %v315_v32, %v314_v30  ;;  %v47_v47 = vrot.slane %v42_v44, %v46_v42  ;;  %v55_v48 = vrot.slane %v42_v44, %v54_v43 }
  0x2b   :  { %v622_v36 = vpack.c.bf16 %v267_v34, %v266_v33  ;;  %v298_v37 = vld [vmem:[#allocation2 + $0x170] sm:$0xff]  ;;  %v299_v38 = vld [vmem:[#allocation2 + $0x178] sm:$0xff]  ;;  %v51_v49 = vrot.slane %v42_v44, %v50_v45  ;;  %v59_v50 = vrot.slane %v42_v44, %v58_v46 }
  0x2c   :  { %v654_v39 = vpack.c.bf16 %v299_v38, %v298_v37 }
  0x2d   :  { %611 = vmatpush3.bf16.msra.mxu0 %v610_v6  ;;  %643 = vmatpush3.bf16.msra.mxu1 %v642_v7 }
  0x2e   :  { %613 = vmatprep.subr.bf16.mxu0 %v612_v10  ;;  %645 = vmatprep.subr.bf16.mxu1 %v644_v11 }
  0x31   :  { %615 = vmatpush3.bf16.msra.mxu0 %v614_v18  ;;  %647 = vmatpush3.bf16.msra.mxu1 %v646_v19 }
  0x32   :  { %617 = vmatprep.subr.bf16.mxu0 %v616_v20  ;;  %649 = vmatprep.subr.bf16.mxu1 %v648_v21 }
  0x35   :  { %619 = vmatpush3.bf16.msra.mxu0 %v618_v25  ;;  %651 = vmatpush3.bf16.msra.mxu1 %v650_v27  ;;  %v509_v25 = vld [vmem:[%s811_s4] ss:$0 sm:$0xff]  ;;  %s713_s4 = smov [#allocation5]  }
  0x36   :  { %621 = vmatprep.subr.bf16.mxu0 %v620_v31  ;;  %653 = vmatprep.subr.bf16.mxu1 %v652_v35  ;;  %s491_s21 = sshll.u32 %s713_s4, 4  ;;  %s492_s21 = int_to_ptr.vmem [resolvable:$true] %s491_s21 }
  0x37   :  { %s683_s22 = scalar_lea.vmem %s492_s21, 384  ;;  %p688_p9 = scmp.lt.s32.totalorder %s492_s21, %s492_s21 }
  0x38   :  { %p684_p8 = scmp.ne.s32.totalorder %s492_s21, %s683_s22  ;;  %p689_p10 = scmp.lt.s32.totalorder %s683_s22, %s683_s22 }
  0x39   :  { %623 = vmatpush3.bf16.msra.mxu0 %v622_v36  ;;  %655 = vmatpush3.bf16.msra.mxu1 %v654_v39 }
  0x3a   :  { %p690_p11 = por %p689_p10, %p688_p9 }
  0x3c   :  { %p691_p12 = pnand %p690_p11, %p684_p8 }
  0xea   :  { %v140_v51 = vpop.f32.mrb[0].mxu0  ;;  %v223_v52 = vpop.f32.mrb[0].mxu1 }
  0xeb   :  { %v141_v53 = vadd.f32 %v140_v51, %v47_v47  ;;  %v224_v54 = vadd.f32 %v223_v52, %v55_v48  ;;  %v142_v55 = vpop.f32.mrb[1].mxu0  ;;  %v225_v56 = vpop.f32.mrb[1].mxu1 }
  0xec   :  { %v143_v57 = vadd.f32 %v142_v55, %v51_v49  ;;  %v226_v58 = vadd.f32 %v225_v56, %v59_v50 }
  0xed   :  { %v242_v59 = vmax.f32 %v224_v54, 0.0  ;;  %v240_v0 = vmax.f32 %v141_v53, 0.0 }
  0xee   :  { %v241_v60 = vmax.f32 %v143_v57, 0.0  ;;  %v243_v61 = vmax.f32 %v226_v58, 0.0  ;;  %v146_v62 = vpop.f32.mrb[2].mxu0  ;;  %v229_v63 = vpop.f32.mrb[2].mxu1 }
  0xef   :  { %v147_v1 = vadd.f32 %v146_v62, %v47_v47  ;;  %v230_v2 = vadd.f32 %v229_v63, %v55_v48  ;;  %v148_v3 = vpop.f32.mrb[3].mxu0  ;;  %v231_v4 = vpop.f32.mrb[3].mxu1 }
  0xf0   :  { %v149_v5 = vadd.f32 %v148_v3, %v51_v49  ;;  %v232_v6 = vadd.f32 %v231_v4, %v59_v50  ;;  %387 = vmatprep.mubr.f32.mxu0 %v241_v60  ;;  %467 = vmatprep.mubr.f32.mxu1 %v243_v61 }
  0xf1   :  { %v246_v7 = vmax.f32 %v230_v2, 0.0  ;;  %388 = vmatmul.mubr.f32.vlgmr.msra.gmra.mrb[6].mxu0 %v240_v0  ;;  %468 = vmatmul.mubr.f32.vlgmr.msra.gmra.mrb[6].mxu1 %v242_v59  ;;  %v244_v12 = vmax.f32 %v147_v1, 0.0 }
  0xf2   :  { %v245_v8 = vmax.f32 %v149_v5, 0.0  ;;  %v247_v9 = vmax.f32 %v232_v6, 0.0  ;;  %v152_v10 = vpop.f32.mrb[4].mxu0  ;;  %v235_v11 = vpop.f32.mrb[4].mxu1 }
  0xf3   :  { %v153_v13 = vadd.f32 %v152_v10, %v47_v47  ;;  %v236_v14 = vadd.f32 %v235_v11, %v55_v48  ;;  %v154_v15 = vpop.f32.mrb[5].mxu0  ;;  %v237_v16 = vpop.f32.mrb[5].mxu1 }
  0xf4   :  { %v155_v17 = vadd.f32 %v154_v15, %v51_v49  ;;  %v238_v18 = vadd.f32 %v237_v16, %v59_v50  ;;  %392 = vmatprep.mubr.f32.mxu0 %v245_v8  ;;  %472 = vmatprep.mubr.f32.mxu1 %v247_v9 }
  0xf5   :  { %v250_v19 = vmax.f32 %v236_v14, 0.0  ;;  %393 = vmatmul.mubr.f32.gmra.mrb[8].mxu0 %v244_v12  ;;  %473 = vmatmul.mubr.f32.gmra.mrb[8].mxu1 %v246_v7  ;;  %v248_v22 = vmax.f32 %v153_v13, 0.0 }
  0xf6   :  { %v249_v20 = vmax.f32 %v155_v17, 0.0  ;;  %v251_v21 = vmax.f32 %v238_v18, 0.0 }
  0xf8   :  { %397 = vmatprep.mubr.f32.mxu0 %v249_v20  ;;  %477 = vmatprep.mubr.f32.mxu1 %v251_v21 }
  0xf9   :  { %398 = vmatmul.mubr.f32.gmra.mrb[10].mxu0 %v248_v22  ;;  %478 = vmatmul.mubr.f32.gmra.mrb[10].mxu1 %v250_v19 }
 0x1c4   :  { %v542_v23 = vpop.f32.mrb[6].mxu0  ;;  %v583_v24 = vpop.f32.mrb[6].mxu1 }
 0x1c5   :  { %v543_v26 = vpop.f32.mrb[7].mxu0  ;;  %v584_v27 = vpop.f32.mrb[7].mxu1 }
 0x1c6   :  { %v544_v28 = vadd.f32 %v543_v26, %v542_v23  ;;  %v585_v29 = vadd.f32 %v584_v27, %v583_v24 }
 0x1c8   :  { %v390_v30 = vadd.f32 %v544_v28, %v509_v25  ;;  %v545_v31 = vpop.f32.mrb[8].mxu0  ;;  %v586_v32 = vpop.f32.mrb[8].mxu1 }
 0x1c9   :  { %v546_v33 = vpop.f32.mrb[9].mxu0  ;;  %v587_v34 = vpop.f32.mrb[9].mxu1 }
 0x1ca   :  { %v470_v35 = vadd.f32 %v585_v29, %v390_v30  ;;  %v547_v36 = vadd.f32 %v546_v33, %v545_v31  ;;  %v588_v37 = vadd.f32 %v587_v34, %v586_v32 }
 0x1cc   :  { %483 = vst [vmem:[#allocation5] sm:$0xff] %v470_v35  ;;  %v395_v38 = vadd.f32 %v547_v36, %v509_v25  ;;  %v548_v39 = vpop.f32.mrb[10].mxu0  ;;  %v589_v40 = vpop.f32.mrb[10].mxu1 }
 0x1cd   :  { %v549_v41 = vpop.f32.mrb[11].mxu0  ;;  %v590_v42 = vpop.f32.mrb[11].mxu1 }
 0x1ce   :  { %v475_v43 = vadd.f32 %v588_v37, %v395_v38  ;;  %v550_v44 = vadd.f32 %v549_v41, %v548_v39  ;;  %v591_v45 = vadd.f32 %v590_v42, %v589_v40 }
 0x1d0   :  { %484 = vst [vmem:[#allocation5 + $0x8] sm:$0xff] %v475_v43  ;;  %v400_v46 = vadd.f32 %v550_v44, %v509_v25 }
 0x1d2   :  { %v480_v47 = vadd.f32 %v591_v45, %v400_v46 }
 0x1d4   :  { %485 = vst [vmem:[#allocation5 + $0x10] sm:$0xff] %v480_v47 }
 0x1d5   :  { %694 = shalt.err (!%p691_p12)
}
 0x1d6   :  { %s695_s25 = scalar_lea.hbm %s812_s5, 384 }
 0x1d7   :  { %p696_p13 = scmp.ne.s32.totalorder %s812_s5, %s695_s25  ;;  %p699_p0 = scmp.lt.u32.totalorder %s695_s25, %s812_s5 }
 0x1d9   :  { %p701_p1 = pnand %p699_p0, %p696_p13 }
 0x1db   :  { %704 = shalt.err (!%p701_p1)
}
 0x1dc   :  { %497 = dma.vmem_to_hbm [thread:$0]  %s492_s21, 384, %s812_s5, [#allocation4], %s710_s28, %s710_s28, %s711_s29  }
 0x1dd   :  { %707 = dma.done.wait [#allocation4], 384  }
 0x1de   :  { %708 = vsyncadd [#allocation4], 4294966912 }
 0x1df   :  { %501 = vsyncpa [#allocation3], 1 }
 0x1e0   :  { %502 = vsyncpa [#allocation4], 1 }

</bundles_post_ra>
